<compile_context>
chip_gen: v5e
topology: v5e:2x2
jax: 0.10.0
libtpu: 0.0.40
codegen_flags: <defaults>
</compile_context>

<pallas_src>
import functools

import jax
import jax.numpy as jnp
from jax import lax
from jax.experimental import pallas as pl
from jax.experimental.pallas import tpu as pltpu

ALPHA = 0.2


def _round_up(x, mlt):
    return (x + mlt - 1) // mlt * mlt


def _rank_rnn_kernel(u_ref, m_ref, nt_ref, whoT_ref, h0_ref, *refs,
                     t_chunk, unroll, inv_h, with_dynamics):
    """Grid = (batch_tiles, time_chunks). One invocation advances t_chunk RNN
    steps for one batch tile and emits the fused Who readout for those steps.

    u_ref    : (t_chunk, TB, Hp)  pre-projected inputs u = Wih(x), time-major
    m_ref    : (Hp, Rp)           low-rank factor m            (f32 or bf16)
    nt_ref   : (Rp, Hp)           low-rank factor n^T          (f32 or bf16)
    whoT_ref : (Hp, Op)           readout weight, transposed   (f32 or bf16)
    h0_ref   : (1, Hp)            initial hidden state (broadcast over batch)
    out_ref  : (t_chunk, TB, Op)  fused Who readout (f32, lane-dense Op)
    traj_ref : (t_chunk, TB, Hp)  [with_dynamics only] hidden trajectory, bf16
    h_scr    : (TB, Hp) f32       hidden-state carry across time chunks
    hbuf     : (t_chunk, TB, Hp)  f32 chunk-local hidden buffer feeding the
                                  per-chunk readout matmul
    """
    if with_dynamics:
        out_ref, traj_ref, h_scr, hbuf = refs
    else:
        out_ref, h_scr, hbuf = refs
        traj_ref = None

    f32 = jnp.float32
    tc = pl.program_id(1)

    # New batch tile -> (re)initialize the hidden-state carry.
    @pl.when(tc == 0)
    def _():
        h_scr[...] = jnp.broadcast_to(h0_ref[...].astype(f32), h_scr.shape)

    m = m_ref[...]          # (Hp, Rp)
    n_t = nt_ref[...]       # (Rp, Hp)
    mm_dtype = m.dtype      # MXU operand dtype (f32 or bf16)

    def step(i, h):
        u_t = u_ref[i].astype(f32)                                   # (TB, Hp)
        # h @ prod == ((h @ m) @ n^T) / H  (rank-R recurrence).  1/H is
        # applied to the f32 result, not pre-folded into a bf16 factor.
        hm = jnp.dot(h.astype(mm_dtype), m,
                     preferred_element_type=f32)                     # (TB, Rp)
        rec = jnp.dot(hm.astype(mm_dtype), n_t,
                      preferred_element_type=f32) * inv_h            # (TB, Hp)
        r = jnp.tanh(u_t + rec)                                      # f32 EUP
        h_new = (1.0 - ALPHA) * h + ALPHA * r                        # f32 blend
        hbuf[i] = h_new
        if with_dynamics:
            traj_ref[i] = h_new.astype(traj_ref.dtype)
        return h_new

    # Partial unroll: LLO scheduler visibility without vreg blow-up at real Hp.
    h_scr[...] = lax.fori_loop(0, t_chunk, step, h_scr[...], unroll=unroll)

    # Fused readout: one (t_chunk*TB, Hp) @ (Hp, Op) MXU matmul per chunk.
    tb, hp = h_scr.shape
    op = out_ref.shape[-1]
    h_flat = hbuf[...].reshape(t_chunk * tb, hp)     # tile-aligned merge (TB%8==0)
    out = jnp.dot(h_flat.astype(mm_dtype), whoT_ref[...],
                  preferred_element_type=f32)                        # (t*TB, Op)
    out_ref[...] = out.reshape(t_chunk, tb, op)


def rank_rnn_forward(x, wih_weight, m, n, who_weight, initial_state=None, *,
                     return_dynamics=False, t_chunk=32, tb_max=128,
                     matmul_dtype=jnp.float32):
    """
    x:             (B, S, I)   float32
    wih_weight:    (H, I)      nn.Linear weight layout (out, in), no bias
    m, n:          (H, R)      low-rank factors, prod = m @ n^T / H
    who_weight:    (O, H)      readout weight (out, in), no bias
    initial_state: (H,), (1,H) or None
    returns:       (B, S, O)   float32  [+ (B, S, H) trajectory if requested]
    """
    B, S, I = x.shape
    H = wih_weight.shape[0]
    R = m.shape[1]
    O = who_weight.shape[0]
    f32 = jnp.float32
    mm_dtype = jnp.dtype(matmul_dtype)

    t_chunk = max(1, min(int(t_chunk), S))        # don't over-chunk short seqs
    unroll = min(t_chunk, 8)                      # partial unroll inside kernel
    TB = min(_round_up(B, 8), int(tb_max))        # batch tile (sublane aligned)
    Bp = _round_up(B, TB)
    Hp = _round_up(H, 128)                        # hidden padded to lane width
    Rp = _round_up(R, 8)
    Op = _round_up(O, 128)                        # lane-dense readout
    Sp = _round_up(S, t_chunk)
    NB = Bp // TB
    NT = Sp // t_chunk

    # --- hoisted input projection: Wih padded to (Hp, I) BEFORE the einsum so
    #     u is born H-padded; fused with the (B,S,*)->(S,B,*) transpose; only
    #     S/B are padded afterwards (no extra full pass over the big tensor).
    wih_p = jnp.zeros((Hp, I), f32).at[:H, :].set(wih_weight.astype(f32))
    u = jnp.einsum('bsi,hi->sbh', x.astype(f32), wih_p)        # (S, B, Hp)
    u_p = jnp.pad(u, ((0, Sp - S), (0, Bp - B), (0, 0))).astype(mm_dtype)

    # --- recurrent factors + readout.  Zero padding keeps padded hidden
    #     columns identically zero through the whole recurrence. -------------
    m_p = jnp.zeros((Hp, Rp), mm_dtype).at[:H, :R].set(m.astype(mm_dtype))
    nt_p = jnp.zeros((Rp, Hp), mm_dtype).at[:R, :H].set(n.T.astype(mm_dtype))
    whoT_p = jnp.zeros((Hp, Op), mm_dtype).at[:H, :O].set(
        who_weight.T.astype(mm_dtype))

    if initial_state is None:
        h0_p = jnp.zeros((1, Hp), f32)
    else:
        h0_p = jnp.zeros((1, Hp), f32).at[0, :H].set(
            initial_state.reshape(-1).astype(f32))

    # --- VMEM budget: double-buffered streamed blocks + weights + scratch,
    #     with headroom; clamps stay within every generation's physical VMEM.
    u_blk = t_chunk * TB * Hp * u_p.dtype.itemsize
    out_blk = t_chunk * TB * Op * 4
    traj_blk = t_chunk * TB * Hp * 2 if return_dynamics else 0
    w_bytes = (Hp * Rp + Rp * Hp + Hp * Op) * mm_dtype.itemsize + Hp * 4
    scr_bytes = TB * Hp * 4 + t_chunk * TB * Hp * 4
    vmem_need = 2 * (u_blk + out_blk + traj_blk + w_bytes) + scr_bytes
    vmem_limit = int(min(max(2 * vmem_need + (4 << 20), 32 << 20), 64 << 20))

    out_shape_list = [jax.ShapeDtypeStruct((Sp, Bp, Op), f32)]
    out_spec_list = [pl.BlockSpec((t_chunk, TB, Op), lambda b, t: (t, b, 0))]
    if return_dynamics:
        out_shape_list.append(jax.ShapeDtypeStruct((Sp, Bp, Hp), jnp.bfloat16))
        out_spec_list.append(
            pl.BlockSpec((t_chunk, TB, Hp), lambda b, t: (t, b, 0)))

    results = pl.pallas_call(
        functools.partial(_rank_rnn_kernel, t_chunk=t_chunk, unroll=unroll,
                          inv_h=1.0 / H, with_dynamics=return_dynamics),
        out_shape=tuple(out_shape_list) if return_dynamics else out_shape_list[0],
        grid_spec=pltpu.PrefetchScalarGridSpec(
            num_scalar_prefetch=0,
            grid=(NB, NT),
            in_specs=[
                pl.BlockSpec((t_chunk, TB, Hp), lambda b, t: (t, b, 0)),  # u
                pl.BlockSpec((Hp, Rp), lambda b, t: (0, 0)),              # m
                pl.BlockSpec((Rp, Hp), lambda b, t: (0, 0)),              # n^T
                pl.BlockSpec((Hp, Op), lambda b, t: (0, 0)),              # Who^T
                pl.BlockSpec((1, Hp), lambda b, t: (0, 0)),               # h0
            ],
            out_specs=tuple(out_spec_list) if return_dynamics else out_spec_list[0],
            scratch_shapes=[
                pltpu.VMEM((TB, Hp), f32),             # hidden-state carry
                pltpu.VMEM((t_chunk, TB, Hp), f32),    # chunk hidden buffer
            ],
        ),
        compiler_params=pltpu.CompilerParams(
            # Batch tiles independent, time sequential.  On v7x set the first
            # axis to pltpu.CORE_PARALLEL to split batch tiles over both TCs.
            dimension_semantics=("parallel", "arbitrary"),
            vmem_limit_bytes=vmem_limit,
        ),
    )(u_p, m_p, nt_p, whoT_p, h0_p)

    if return_dynamics:
        out_p, traj_p = results
    else:
        out_p = results

    out = jnp.transpose(out_p[:S, :B, :O], (1, 0, 2))           # (B, S, O)
    if return_dynamics:
        traj = jnp.transpose(traj_p[:S, :B, :H], (1, 0, 2)).astype(f32)
        return out, traj
    return out


def rank_rnn_reference(x, wih_weight, m, n, who_weight, initial_state,
                       return_dynamics=False):
    """Plain-JAX reference mirroring the PyTorch loop (eval mode, tanh)."""
    B, S, _ = x.shape
    H = wih_weight.shape[0]
    prod = (m @ n.T) / H
    u = jnp.einsum('bsi,hi->bsh', x, wih_weight)
    if initial_state is None:
        h = jnp.zeros((1, H), jnp.float32)
    else:
        h = initial_state.reshape(1, H).astype(jnp.float32)
    h = jnp.broadcast_to(h, (B, H))
    outs, trajs = [], []
    for t in range(S):
        r = jnp.tanh(u[:, t] + h @ prod)
        h = (1.0 - ALPHA) * h + ALPHA * r
        outs.append(h @ who_weight.T)
        trajs.append(h)
    out = jnp.stack(outs, axis=1)
    if return_dynamics:
        return out, jnp.stack(trajs, axis=1)
    return out


if __name__ == "__main__":
    # Small shapes consistent with the module's forward.
    batch, seq, input_size, hidden_size, output_size, rank = 2, 8, 4, 32, 3, 2

    key = jax.random.PRNGKey(0)
    k_x, k_wih, k_who, k_m, k_n, k_h0 = jax.random.split(key, 6)

    x = jax.random.normal(k_x, (batch, seq, input_size), jnp.float32)
    wih_weight = jax.random.normal(k_wih, (hidden_size, input_size), jnp.float32) * 0.3
    who_weight = jax.random.normal(k_who, (output_size, hidden_size), jnp.float32) * 0.3
    # Low-rank recurrent parameterization: prod = m @ n^T / H.
    m = jax.random.normal(k_m, (hidden_size, rank), jnp.float32)
    n = jax.random.normal(k_n, (hidden_size, rank), jnp.float32)
    initial_state = jax.random.normal(k_h0, (hidden_size,), jnp.float32) * 0.1

    # TODO(synk): training-mode gaussian noise injection (torch.randn_like*0.01)
    # not emitted; eval-mode forward only.

    ref_out, ref_traj = rank_rnn_reference(x, wih_weight, m, n, who_weight,
                                           initial_state, return_dynamics=True)

    # 1) f32 MXU-operand path (tight check).
    out = rank_rnn_forward(x, wih_weight, m, n, who_weight, initial_state)
    out = jax.block_until_ready(out)
    assert out.shape == (batch, seq, output_size)
    assert jnp.allclose(out, ref_out, atol=1e-5, rtol=1e-5), \
        float(jnp.max(jnp.abs(out - ref_out)))

    # 2) bf16 MXU-operand path (f32 carry/tanh/blend/accumulate), loose check.
    out_bf16 = rank_rnn_forward(x, wih_weight, m, n, who_weight, initial_state,
                                matmul_dtype=jnp.bfloat16)
    out_bf16 = jax.block_until_ready(out_bf16)
    assert jnp.allclose(out_bf16, ref_out, atol=5e-2, rtol=5e-2), \
        float(jnp.max(jnp.abs(out_bf16 - ref_out)))

    # 3) return_dynamics path (bf16 trajectory writeback).
    out_d, traj = rank_rnn_forward(x, wih_weight, m, n, who_weight,
                                   initial_state, return_dynamics=True)
    jax.block_until_ready((out_d, traj))
    assert traj.shape == (batch, seq, hidden_size)
    assert jnp.allclose(out_d, ref_out, atol=1e-5, rtol=1e-5)
    assert jnp.allclose(traj, ref_traj, atol=2e-2, rtol=2e-2), \
        float(jnp.max(jnp.abs(traj - ref_traj)))

    print("KERNEL_OK")
</pallas_src>

<mosaic_0001>
module attributes {stable_mosaic.version = 11 : i64} {
  func.func @_rank_rnn_kernel(%arg0: i32, %arg1: i32, %arg2: memref<8x8x128xf32, #tpu.memory_space<vmem>>, %arg3: memref<128x8xf32, #tpu.memory_space<vmem>>, %arg4: memref<8x128xf32, #tpu.memory_space<vmem>>, %arg5: memref<128x128xf32, #tpu.memory_space<vmem>>, %arg6: memref<1x128xf32, #tpu.memory_space<vmem>>, %arg7: memref<8x8x128xf32, #tpu.memory_space<vmem>>, %arg8: memref<8x128xf32, #tpu.memory_space<vmem>>, %arg9: memref<8x8x128xf32, #tpu.memory_space<vmem>>) attributes {dimension_semantics = [#tpu.dimension_semantics<parallel>, #tpu.dimension_semantics<arbitrary>], iteration_bounds = array<i64: 1, 1>, scalar_prefetch = 0 : i64, scratch_operands = 2 : i64, tpu.core_type = #tpu.core_type<tc>, window_params = [{transform_indices = @transform_0, window_bounds = array<i64: 8, 8, 128>}, {pipeline_mode = #tpu.pipeline_mode<synchronous>, transform_indices = @transform_1, window_bounds = array<i64: 128, 8>}, {pipeline_mode = #tpu.pipeline_mode<synchronous>, transform_indices = @transform_2, window_bounds = array<i64: 8, 128>}, {pipeline_mode = #tpu.pipeline_mode<synchronous>, transform_indices = @transform_3, window_bounds = array<i64: 128, 128>}, {pipeline_mode = #tpu.pipeline_mode<synchronous>, transform_indices = @transform_4, window_bounds = array<i64: 1, 128>}, {transform_indices = @transform_5, window_bounds = array<i64: 8, 8, 128>}]} {
    %c0_i32 = arith.constant 0 : i32
    %0 = arith.cmpi eq, %arg1, %c0_i32 : i32
    %1 = arith.extui %0 : i1 to i32
    %c0_i32_0 = arith.constant 0 : i32
    %2 = arith.cmpi ne, %1, %c0_i32_0 : i32
    scf.if %2 {
      %c0_89 = arith.constant 0 : index
      %c0_90 = arith.constant 0 : index
      %157 = vector.load %arg6[%c0_89, %c0_90] : memref<1x128xf32, #tpu.memory_space<vmem>>, vector<1x128xf32>
      %158 = vector.shape_cast %157 : vector<1x128xf32> to vector<1x128xf32>
      %159 = vector.broadcast %158 : vector<1x128xf32> to vector<8x128xf32>
      %c0_91 = arith.constant 0 : index
      %c0_92 = arith.constant 0 : index
      %160 = vector.load %arg8[%c0_91, %c0_92] : memref<8x128xf32, #tpu.memory_space<vmem>>, vector<8x128xf32>
      tpu.vector_store %arg8[%c0_91, %c0_92], %159 {strides = array<i32>} : memref<8x128xf32, #tpu.memory_space<vmem>>, vector<8x128xf32>,
    } else {
    }
    %c0 = arith.constant 0 : index
    %c0_1 = arith.constant 0 : index
    %3 = vector.load %arg3[%c0, %c0_1] : memref<128x8xf32, #tpu.memory_space<vmem>>, vector<128x8xf32>
    %c0_2 = arith.constant 0 : index
    %c0_3 = arith.constant 0 : index
    %4 = vector.load %arg4[%c0_2, %c0_3] : memref<8x128xf32, #tpu.memory_space<vmem>>, vector<8x128xf32>
    %c0_4 = arith.constant 0 : index
    %c0_5 = arith.constant 0 : index
    %5 = vector.load %arg8[%c0_4, %c0_5] : memref<8x128xf32, #tpu.memory_space<vmem>>, vector<8x128xf32>
    %c0_i32_6 = arith.constant 0 : i32
    %6 = arith.index_cast %c0_i32_6 : i32 to index
    %c0_7 = arith.constant 0 : index
    %c0_8 = arith.constant 0 : index
    %7 = vector.load %arg2[%6, %c0_7, %c0_8] : memref<8x8x128xf32, #tpu.memory_space<vmem>>, vector<1x8x128xf32>
    %8 = vector.shape_cast %7 : vector<1x8x128xf32> to vector<8x128xf32>
    %cst = arith.constant dense<0.000000e+00> : vector<8x8xf32>
    %9 = tpu.matmul %5, %3, %cst {dimension_numbers = #tpu.dot_dimension_numbers<[1], [0], [0], [1], [0, 0, 1, 1], [], []>} : vector<8x128xf32>, vector<128x8xf32>, vector<8x8xf32> -> vector<8x8xf32>
    %cst_9 = arith.constant dense<0.000000e+00> : vector<8x128xf32>
    %10 = tpu.matmul %9, %4, %cst_9 {dimension_numbers = #tpu.dot_dimension_numbers<[1], [0], [0], [1], [0, 0, 1, 1], [], []>} : vector<8x8xf32>, vector<8x128xf32>, vector<8x128xf32> -> vector<8x128xf32>
    %cst_10 = arith.constant 3.125000e-02 : f32
    %11 = vector.broadcast %cst_10 : f32 to vector<8x128xf32>
    %12 = arith.mulf %10, %11 : vector<8x128xf32>
    %13 = arith.addf %8, %12 : vector<8x128xf32>
    %14 = math.tanh %13 : vector<8x128xf32>
    %cst_11 = arith.constant 8.000000e-01 : f32
    %15 = vector.broadcast %cst_11 : f32 to vector<8x128xf32>
    %16 = arith.mulf %15, %5 : vector<8x128xf32>
    %cst_12 = arith.constant 2.000000e-01 : f32
    %17 = vector.broadcast %cst_12 : f32 to vector<8x128xf32>
    %18 = arith.mulf %17, %14 : vector<8x128xf32>
    %19 = arith.addf %16, %18 : vector<8x128xf32>
    %20 = arith.index_cast %c0_i32_6 : i32 to index
    %c0_13 = arith.constant 0 : index
    %c0_14 = arith.constant 0 : index
    %21 = vector.load %arg9[%20, %c0_13, %c0_14] : memref<8x8x128xf32, #tpu.memory_space<vmem>>, vector<1x8x128xf32>
    %22 = vector.shape_cast %21 : vector<1x8x128xf32> to vector<8x128xf32>
    %23 = vector.shape_cast %19 : vector<8x128xf32> to vector<1x8x128xf32>
    tpu.vector_store %arg9[%20, %c0_13, %c0_14], %23 {strides = array<i32>} : memref<8x8x128xf32, #tpu.memory_space<vmem>>, vector<1x8x128xf32>,
    %c1_i32 = arith.constant 1 : i32
    %24 = arith.index_cast %c1_i32 : i32 to index
    %c0_15 = arith.constant 0 : index
    %c0_16 = arith.constant 0 : index
    %25 = vector.load %arg2[%24, %c0_15, %c0_16] : memref<8x8x128xf32, #tpu.memory_space<vmem>>, vector<1x8x128xf32>
    %26 = vector.shape_cast %25 : vector<1x8x128xf32> to vector<8x128xf32>
    %cst_17 = arith.constant dense<0.000000e+00> : vector<8x8xf32>
    %27 = tpu.matmul %19, %3, %cst_17 {dimension_numbers = #tpu.dot_dimension_numbers<[1], [0], [0], [1], [0, 0, 1, 1], [], []>} : vector<8x128xf32>, vector<128x8xf32>, vector<8x8xf32> -> vector<8x8xf32>
    %cst_18 = arith.constant dense<0.000000e+00> : vector<8x128xf32>
    %28 = tpu.matmul %27, %4, %cst_18 {dimension_numbers = #tpu.dot_dimension_numbers<[1], [0], [0], [1], [0, 0, 1, 1], [], []>} : vector<8x8xf32>, vector<8x128xf32>, vector<8x128xf32> -> vector<8x128xf32>
    %cst_19 = arith.constant 3.125000e-02 : f32
    %29 = vector.broadcast %cst_19 : f32 to vector<8x128xf32>
    %30 = arith.mulf %28, %29 : vector<8x128xf32>
    %31 = arith.addf %26, %30 : vector<8x128xf32>
    %32 = math.tanh %31 : vector<8x128xf32>
    %cst_20 = arith.constant 8.000000e-01 : f32
    %33 = vector.broadcast %cst_20 : f32 to vector<8x128xf32>
    %34 = arith.mulf %33, %19 : vector<8x128xf32>
    %cst_21 = arith.constant 2.000000e-01 : f32
    %35 = vector.broadcast %cst_21 : f32 to vector<8x128xf32>
    %36 = arith.mulf %35, %32 : vector<8x128xf32>
    %37 = arith.addf %34, %36 : vector<8x128xf32>
    %38 = arith.index_cast %c1_i32 : i32 to index
    %c0_22 = arith.constant 0 : index
    %c0_23 = arith.constant 0 : index
    %39 = vector.load %arg9[%38, %c0_22, %c0_23] : memref<8x8x128xf32, #tpu.memory_space<vmem>>, vector<1x8x128xf32>
    %40 = vector.shape_cast %39 : vector<1x8x128xf32> to vector<8x128xf32>
    %41 = vector.shape_cast %37 : vector<8x128xf32> to vector<1x8x128xf32>
    tpu.vector_store %arg9[%38, %c0_22, %c0_23], %41 {strides = array<i32>} : memref<8x8x128xf32, #tpu.memory_space<vmem>>, vector<1x8x128xf32>,
    %c2_i32 = arith.constant 2 : i32
    %42 = arith.index_cast %c2_i32 : i32 to index
    %c0_24 = arith.constant 0 : index
    %c0_25 = arith.constant 0 : index
    %43 = vector.load %arg2[%42, %c0_24, %c0_25] : memref<8x8x128xf32, #tpu.memory_space<vmem>>, vector<1x8x128xf32>
    %44 = vector.shape_cast %43 : vector<1x8x128xf32> to vector<8x128xf32>
    %cst_26 = arith.constant dense<0.000000e+00> : vector<8x8xf32>
    %45 = tpu.matmul %37, %3, %cst_26 {dimension_numbers = #tpu.dot_dimension_numbers<[1], [0], [0], [1], [0, 0, 1, 1], [], []>} : vector<8x128xf32>, vector<128x8xf32>, vector<8x8xf32> -> vector<8x8xf32>
    %cst_27 = arith.constant dense<0.000000e+00> : vector<8x128xf32>
    %46 = tpu.matmul %45, %4, %cst_27 {dimension_numbers = #tpu.dot_dimension_numbers<[1], [0], [0], [1], [0, 0, 1, 1], [], []>} : vector<8x8xf32>, vector<8x128xf32>, vector<8x128xf32> -> vector<8x128xf32>
    %cst_28 = arith.constant 3.125000e-02 : f32
    %47 = vector.broadcast %cst_28 : f32 to vector<8x128xf32>
    %48 = arith.mulf %46, %47 : vector<8x128xf32>
    %49 = arith.addf %44, %48 : vector<8x128xf32>
    %50 = math.tanh %49 : vector<8x128xf32>
    %cst_29 = arith.constant 8.000000e-01 : f32
    %51 = vector.broadcast %cst_29 : f32 to vector<8x128xf32>
    %52 = arith.mulf %51, %37 : vector<8x128xf32>
    %cst_30 = arith.constant 2.000000e-01 : f32
    %53 = vector.broadcast %cst_30 : f32 to vector<8x128xf32>
    %54 = arith.mulf %53, %50 : vector<8x128xf32>
    %55 = arith.addf %52, %54 : vector<8x128xf32>
    %56 = arith.index_cast %c2_i32 : i32 to index
    %c0_31 = arith.constant 0 : index
    %c0_32 = arith.constant 0 : index
    %57 = vector.load %arg9[%56, %c0_31, %c0_32] : memref<8x8x128xf32, #tpu.memory_space<vmem>>, vector<1x8x128xf32>
    %58 = vector.shape_cast %57 : vector<1x8x128xf32> to vector<8x128xf32>
    %59 = vector.shape_cast %55 : vector<8x128xf32> to vector<1x8x128xf32>
    tpu.vector_store %arg9[%56, %c0_31, %c0_32], %59 {strides = array<i32>} : memref<8x8x128xf32, #tpu.memory_space<vmem>>, vector<1x8x128xf32>,
    %c3_i32 = arith.constant 3 : i32
    %60 = arith.index_cast %c3_i32 : i32 to index
    %c0_33 = arith.constant 0 : index
    %c0_34 = arith.constant 0 : index
    %61 = vector.load %arg2[%60, %c0_33, %c0_34] : memref<8x8x128xf32, #tpu.memory_space<vmem>>, vector<1x8x128xf32>
    %62 = vector.shape_cast %61 : vector<1x8x128xf32> to vector<8x128xf32>
    %cst_35 = arith.constant dense<0.000000e+00> : vector<8x8xf32>
    %63 = tpu.matmul %55, %3, %cst_35 {dimension_numbers = #tpu.dot_dimension_numbers<[1], [0], [0], [1], [0, 0, 1, 1], [], []>} : vector<8x128xf32>, vector<128x8xf32>, vector<8x8xf32> -> vector<8x8xf32>
    %cst_36 = arith.constant dense<0.000000e+00> : vector<8x128xf32>
    %64 = tpu.matmul %63, %4, %cst_36 {dimension_numbers = #tpu.dot_dimension_numbers<[1], [0], [0], [1], [0, 0, 1, 1], [], []>} : vector<8x8xf32>, vector<8x128xf32>, vector<8x128xf32> -> vector<8x128xf32>
    %cst_37 = arith.constant 3.125000e-02 : f32
    %65 = vector.broadcast %cst_37 : f32 to vector<8x128xf32>
    %66 = arith.mulf %64, %65 : vector<8x128xf32>
    %67 = arith.addf %62, %66 : vector<8x128xf32>
    %68 = math.tanh %67 : vector<8x128xf32>
    %cst_38 = arith.constant 8.000000e-01 : f32
    %69 = vector.broadcast %cst_38 : f32 to vector<8x128xf32>
    %70 = arith.mulf %69, %55 : vector<8x128xf32>
    %cst_39 = arith.constant 2.000000e-01 : f32
    %71 = vector.broadcast %cst_39 : f32 to vector<8x128xf32>
    %72 = arith.mulf %71, %68 : vector<8x128xf32>
    %73 = arith.addf %70, %72 : vector<8x128xf32>
    %74 = arith.index_cast %c3_i32 : i32 to index
    %c0_40 = arith.constant 0 : index
    %c0_41 = arith.constant 0 : index
    %75 = vector.load %arg9[%74, %c0_40, %c0_41] : memref<8x8x128xf32, #tpu.memory_space<vmem>>, vector<1x8x128xf32>
    %76 = vector.shape_cast %75 : vector<1x8x128xf32> to vector<8x128xf32>
    %77 = vector.shape_cast %73 : vector<8x128xf32> to vector<1x8x128xf32>
    tpu.vector_store %arg9[%74, %c0_40, %c0_41], %77 {strides = array<i32>} : memref<8x8x128xf32, #tpu.memory_space<vmem>>, vector<1x8x128xf32>,
    %c4_i32 = arith.constant 4 : i32
    %78 = arith.index_cast %c4_i32 : i32 to index
    %c0_42 = arith.constant 0 : index
    %c0_43 = arith.constant 0 : index
    %79 = vector.load %arg2[%78, %c0_42, %c0_43] : memref<8x8x128xf32, #tpu.memory_space<vmem>>, vector<1x8x128xf32>
    %80 = vector.shape_cast %79 : vector<1x8x128xf32> to vector<8x128xf32>
    %cst_44 = arith.constant dense<0.000000e+00> : vector<8x8xf32>
    %81 = tpu.matmul %73, %3, %cst_44 {dimension_numbers = #tpu.dot_dimension_numbers<[1], [0], [0], [1], [0, 0, 1, 1], [], []>} : vector<8x128xf32>, vector<128x8xf32>, vector<8x8xf32> -> vector<8x8xf32>
    %cst_45 = arith.constant dense<0.000000e+00> : vector<8x128xf32>
    %82 = tpu.matmul %81, %4, %cst_45 {dimension_numbers = #tpu.dot_dimension_numbers<[1], [0], [0], [1], [0, 0, 1, 1], [], []>} : vector<8x8xf32>, vector<8x128xf32>, vector<8x128xf32> -> vector<8x128xf32>
    %cst_46 = arith.constant 3.125000e-02 : f32
    %83 = vector.broadcast %cst_46 : f32 to vector<8x128xf32>
    %84 = arith.mulf %82, %83 : vector<8x128xf32>
    %85 = arith.addf %80, %84 : vector<8x128xf32>
    %86 = math.tanh %85 : vector<8x128xf32>
    %cst_47 = arith.constant 8.000000e-01 : f32
    %87 = vector.broadcast %cst_47 : f32 to vector<8x128xf32>
    %88 = arith.mulf %87, %73 : vector<8x128xf32>
    %cst_48 = arith.constant 2.000000e-01 : f32
    %89 = vector.broadcast %cst_48 : f32 to vector<8x128xf32>
    %90 = arith.mulf %89, %86 : vector<8x128xf32>
    %91 = arith.addf %88, %90 : vector<8x128xf32>
    %92 = arith.index_cast %c4_i32 : i32 to index
    %c0_49 = arith.constant 0 : index
    %c0_50 = arith.constant 0 : index
    %93 = vector.load %arg9[%92, %c0_49, %c0_50] : memref<8x8x128xf32, #tpu.memory_space<vmem>>, vector<1x8x128xf32>
    %94 = vector.shape_cast %93 : vector<1x8x128xf32> to vector<8x128xf32>
    %95 = vector.shape_cast %91 : vector<8x128xf32> to vector<1x8x128xf32>
    tpu.vector_store %arg9[%92, %c0_49, %c0_50], %95 {strides = array<i32>} : memref<8x8x128xf32, #tpu.memory_space<vmem>>, vector<1x8x128xf32>,
    %c5_i32 = arith.constant 5 : i32
    %96 = arith.index_cast %c5_i32 : i32 to index
    %c0_51 = arith.constant 0 : index
    %c0_52 = arith.constant 0 : index
    %97 = vector.load %arg2[%96, %c0_51, %c0_52] : memref<8x8x128xf32, #tpu.memory_space<vmem>>, vector<1x8x128xf32>
    %98 = vector.shape_cast %97 : vector<1x8x128xf32> to vector<8x128xf32>
    %cst_53 = arith.constant dense<0.000000e+00> : vector<8x8xf32>
    %99 = tpu.matmul %91, %3, %cst_53 {dimension_numbers = #tpu.dot_dimension_numbers<[1], [0], [0], [1], [0, 0, 1, 1], [], []>} : vector<8x128xf32>, vector<128x8xf32>, vector<8x8xf32> -> vector<8x8xf32>
    %cst_54 = arith.constant dense<0.000000e+00> : vector<8x128xf32>
    %100 = tpu.matmul %99, %4, %cst_54 {dimension_numbers = #tpu.dot_dimension_numbers<[1], [0], [0], [1], [0, 0, 1, 1], [], []>} : vector<8x8xf32>, vector<8x128xf32>, vector<8x128xf32> -> vector<8x128xf32>
    %cst_55 = arith.constant 3.125000e-02 : f32
    %101 = vector.broadcast %cst_55 : f32 to vector<8x128xf32>
    %102 = arith.mulf %100, %101 : vector<8x128xf32>
    %103 = arith.addf %98, %102 : vector<8x128xf32>
    %104 = math.tanh %103 : vector<8x128xf32>
    %cst_56 = arith.constant 8.000000e-01 : f32
    %105 = vector.broadcast %cst_56 : f32 to vector<8x128xf32>
    %106 = arith.mulf %105, %91 : vector<8x128xf32>
    %cst_57 = arith.constant 2.000000e-01 : f32
    %107 = vector.broadcast %cst_57 : f32 to vector<8x128xf32>
    %108 = arith.mulf %107, %104 : vector<8x128xf32>
    %109 = arith.addf %106, %108 : vector<8x128xf32>
    %110 = arith.index_cast %c5_i32 : i32 to index
    %c0_58 = arith.constant 0 : index
    %c0_59 = arith.constant 0 : index
    %111 = vector.load %arg9[%110, %c0_58, %c0_59] : memref<8x8x128xf32, #tpu.memory_space<vmem>>, vector<1x8x128xf32>
    %112 = vector.shape_cast %111 : vector<1x8x128xf32> to vector<8x128xf32>
    %113 = vector.shape_cast %109 : vector<8x128xf32> to vector<1x8x128xf32>
    tpu.vector_store %arg9[%110, %c0_58, %c0_59], %113 {strides = array<i32>} : memref<8x8x128xf32, #tpu.memory_space<vmem>>, vector<1x8x128xf32>,
    %c6_i32 = arith.constant 6 : i32
    %114 = arith.index_cast %c6_i32 : i32 to index
    %c0_60 = arith.constant 0 : index
    %c0_61 = arith.constant 0 : index
    %115 = vector.load %arg2[%114, %c0_60, %c0_61] : memref<8x8x128xf32, #tpu.memory_space<vmem>>, vector<1x8x128xf32>
    %116 = vector.shape_cast %115 : vector<1x8x128xf32> to vector<8x128xf32>
    %cst_62 = arith.constant dense<0.000000e+00> : vector<8x8xf32>
    %117 = tpu.matmul %109, %3, %cst_62 {dimension_numbers = #tpu.dot_dimension_numbers<[1], [0], [0], [1], [0, 0, 1, 1], [], []>} : vector<8x128xf32>, vector<128x8xf32>, vector<8x8xf32> -> vector<8x8xf32>
    %cst_63 = arith.constant dense<0.000000e+00> : vector<8x128xf32>
    %118 = tpu.matmul %117, %4, %cst_63 {dimension_numbers = #tpu.dot_dimension_numbers<[1], [0], [0], [1], [0, 0, 1, 1], [], []>} : vector<8x8xf32>, vector<8x128xf32>, vector<8x128xf32> -> vector<8x128xf32>
    %cst_64 = arith.constant 3.125000e-02 : f32
    %119 = vector.broadcast %cst_64 : f32 to vector<8x128xf32>
    %120 = arith.mulf %118, %119 : vector<8x128xf32>
    %121 = arith.addf %116, %120 : vector<8x128xf32>
    %122 = math.tanh %121 : vector<8x128xf32>
    %cst_65 = arith.constant 8.000000e-01 : f32
    %123 = vector.broadcast %cst_65 : f32 to vector<8x128xf32>
    %124 = arith.mulf %123, %109 : vector<8x128xf32>
    %cst_66 = arith.constant 2.000000e-01 : f32
    %125 = vector.broadcast %cst_66 : f32 to vector<8x128xf32>
    %126 = arith.mulf %125, %122 : vector<8x128xf32>
    %127 = arith.addf %124, %126 : vector<8x128xf32>
    %128 = arith.index_cast %c6_i32 : i32 to index
    %c0_67 = arith.constant 0 : index
    %c0_68 = arith.constant 0 : index
    %129 = vector.load %arg9[%128, %c0_67, %c0_68] : memref<8x8x128xf32, #tpu.memory_space<vmem>>, vector<1x8x128xf32>
    %130 = vector.shape_cast %129 : vector<1x8x128xf32> to vector<8x128xf32>
    %131 = vector.shape_cast %127 : vector<8x128xf32> to vector<1x8x128xf32>
    tpu.vector_store %arg9[%128, %c0_67, %c0_68], %131 {strides = array<i32>} : memref<8x8x128xf32, #tpu.memory_space<vmem>>, vector<1x8x128xf32>,
    %c7_i32 = arith.constant 7 : i32
    %132 = arith.index_cast %c7_i32 : i32 to index
    %c0_69 = arith.constant 0 : index
    %c0_70 = arith.constant 0 : index
    %133 = vector.load %arg2[%132, %c0_69, %c0_70] : memref<8x8x128xf32, #tpu.memory_space<vmem>>, vector<1x8x128xf32>
    %134 = vector.shape_cast %133 : vector<1x8x128xf32> to vector<8x128xf32>
    %cst_71 = arith.constant dense<0.000000e+00> : vector<8x8xf32>
    %135 = tpu.matmul %127, %3, %cst_71 {dimension_numbers = #tpu.dot_dimension_numbers<[1], [0], [0], [1], [0, 0, 1, 1], [], []>} : vector<8x128xf32>, vector<128x8xf32>, vector<8x8xf32> -> vector<8x8xf32>
    %cst_72 = arith.constant dense<0.000000e+00> : vector<8x128xf32>
    %136 = tpu.matmul %135, %4, %cst_72 {dimension_numbers = #tpu.dot_dimension_numbers<[1], [0], [0], [1], [0, 0, 1, 1], [], []>} : vector<8x8xf32>, vector<8x128xf32>, vector<8x128xf32> -> vector<8x128xf32>
    %cst_73 = arith.constant 3.125000e-02 : f32
    %137 = vector.broadcast %cst_73 : f32 to vector<8x128xf32>
    %138 = arith.mulf %136, %137 : vector<8x128xf32>
    %139 = arith.addf %134, %138 : vector<8x128xf32>
    %140 = math.tanh %139 : vector<8x128xf32>
    %cst_74 = arith.constant 8.000000e-01 : f32
    %141 = vector.broadcast %cst_74 : f32 to vector<8x128xf32>
    %142 = arith.mulf %141, %127 : vector<8x128xf32>
    %cst_75 = arith.constant 2.000000e-01 : f32
    %143 = vector.broadcast %cst_75 : f32 to vector<8x128xf32>
    %144 = arith.mulf %143, %140 : vector<8x128xf32>
    %145 = arith.addf %142, %144 : vector<8x128xf32>
    %146 = arith.index_cast %c7_i32 : i32 to index
    %c0_76 = arith.constant 0 : index
    %c0_77 = arith.constant 0 : index
    %147 = vector.load %arg9[%146, %c0_76, %c0_77] : memref<8x8x128xf32, #tpu.memory_space<vmem>>, vector<1x8x128xf32>
    %148 = vector.shape_cast %147 : vector<1x8x128xf32> to vector<8x128xf32>
    %149 = vector.shape_cast %145 : vector<8x128xf32> to vector<1x8x128xf32>
    tpu.vector_store %arg9[%146, %c0_76, %c0_77], %149 {strides = array<i32>} : memref<8x8x128xf32, #tpu.memory_space<vmem>>, vector<1x8x128xf32>,
    %c8_i32 = arith.constant 8 : i32
    %c0_78 = arith.constant 0 : index
    %c0_79 = arith.constant 0 : index
    %150 = vector.load %arg8[%c0_78, %c0_79] : memref<8x128xf32, #tpu.memory_space<vmem>>, vector<8x128xf32>
    tpu.vector_store %arg8[%c0_78, %c0_79], %145 {strides = array<i32>} : memref<8x128xf32, #tpu.memory_space<vmem>>, vector<8x128xf32>,
    %c0_80 = arith.constant 0 : index
    %c0_81 = arith.constant 0 : index
    %c0_82 = arith.constant 0 : index
    %151 = vector.load %arg9[%c0_80, %c0_81, %c0_82] : memref<8x8x128xf32, #tpu.memory_space<vmem>>, vector<8x8x128xf32>
    %152 = vector.shape_cast %151 : vector<8x8x128xf32> to vector<64x128xf32>
    %c0_83 = arith.constant 0 : index
    %c0_84 = arith.constant 0 : index
    %153 = vector.load %arg5[%c0_83, %c0_84] : memref<128x128xf32, #tpu.memory_space<vmem>>, vector<128x128xf32>
    %cst_85 = arith.constant dense<0.000000e+00> : vector<64x128xf32>
    %154 = tpu.matmul %152, %153, %cst_85 {dimension_numbers = #tpu.dot_dimension_numbers<[1], [0], [0], [1], [0, 0, 1, 1], [], []>} : vector<64x128xf32>, vector<128x128xf32>, vector<64x128xf32> -> vector<64x128xf32>
    %155 = vector.shape_cast %154 : vector<64x128xf32> to vector<8x8x128xf32>
    %c0_86 = arith.constant 0 : index
    %c0_87 = arith.constant 0 : index
    %c0_88 = arith.constant 0 : index
    %156 = vector.load %arg7[%c0_86, %c0_87, %c0_88] : memref<8x8x128xf32, #tpu.memory_space<vmem>>, vector<8x8x128xf32>
    tpu.vector_store %arg7[%c0_86, %c0_87, %c0_88], %155 {strides = array<i32>} : memref<8x8x128xf32, #tpu.memory_space<vmem>>, vector<8x8x128xf32>,
    return
  }
  func.func @transform_0(%arg0: i32, %arg1: i32) -> (i32, i32, i32) {
    %c0_i32 = arith.constant 0 : i32
    %c0_i32_0 = arith.constant 0 : i32
    return %arg1, %arg0, %c0_i32 : i32, i32, i32
  }
  func.func @transform_1(%arg0: i32, %arg1: i32) -> (i32, i32) {
    %c0_i32 = arith.constant 0 : i32
    %c0_i32_0 = arith.constant 0 : i32
    %c0_i32_1 = arith.constant 0 : i32
    return %c0_i32, %c0_i32_0 : i32, i32
  }
  func.func @transform_2(%arg0: i32, %arg1: i32) -> (i32, i32) {
    %c0_i32 = arith.constant 0 : i32
    %c0_i32_0 = arith.constant 0 : i32
    %c0_i32_1 = arith.constant 0 : i32
    return %c0_i32, %c0_i32_0 : i32, i32
  }
  func.func @transform_3(%arg0: i32, %arg1: i32) -> (i32, i32) {
    %c0_i32 = arith.constant 0 : i32
    %c0_i32_0 = arith.constant 0 : i32
    %c0_i32_1 = arith.constant 0 : i32
    return %c0_i32, %c0_i32_0 : i32, i32
  }
  func.func @transform_4(%arg0: i32, %arg1: i32) -> (i32, i32) {
    %c0_i32 = arith.constant 0 : i32
    %c0_i32_0 = arith.constant 0 : i32
    %c0_i32_1 = arith.constant 0 : i32
    return %c0_i32, %c0_i32_0 : i32, i32
  }
  func.func @transform_5(%arg0: i32, %arg1: i32) -> (i32, i32, i32) {
    %c0_i32 = arith.constant 0 : i32
    %c0_i32_0 = arith.constant 0 : i32
    return %arg1, %arg0, %c0_i32 : i32, i32, i32
  }
}

</mosaic_0001>

<bundles_post_ra>
// kernel: tpu_custom_call.1
= control target key start
LH: loop header
LB: loop body
LE: loop exit
PB: predicated region body
PF: predicated region fallthrough
CT: control target
= control target key end

     0   :  { %10 = vsyncpa [#allocation5], 0  ;;  %s1001_s0 = inlined_call_operand.hbm [shape: f32[8,8,128], index: 0, kind: input, shape index: {}]   ;;  %s1002_s1 = inlined_call_operand.vmem [shape: f32[128,8], index: 1, kind: input, shape index: {}]   ;;  %s1003_s2 = inlined_call_operand.vmem [shape: f32[8,128], index: 2, kind: input, shape index: {}]   ;;  %s1004_s3 = inlined_call_operand.vmem [shape: f32[128,128], index: 3, kind: input, shape index: {}]   ;;  %s1005_s4 = inlined_call_operand.vmem [shape: f32[1,128], index: 4, kind: input, shape index: {}]   ;;  %s1006_s5 = inlined_call_operand.hbm [shape: f32[8,8,128], index: 5, kind: output, shape index: {}]  }
   0x1   :  { %11 = vsyncpa [#allocation6], 0  ;;  %s16_s20 = sshll.u32 %s1001_s0, 4  ;;  %s661_s21 = smov [#allocation4]   ;;  %s17_s20 = int_to_ptr.hbm [resolvable:$true] %s16_s20 }
   0x2   :  { %s18_s22 = sshll.u32 %s661_s21, 4  ;;  %s662_s23 = smov 128   ;;  %s19_s22 = int_to_ptr.vmem [resolvable:$true] %s18_s22 }
   0x3   :  { %s663_s24 = smov 8  }
   0x4   :  { %24 = dma.hbm_to_vmem [thread:$0]  %s17_s20, 1024, %s19_s22, [#allocation5], %s662_s23, %s662_s23, %s663_s24  }
   0x5   :  { %657 = dma.done.wait [#allocation5], 1024  }
   0x6   :  { %658 = vsyncadd [#allocation5], 4294966272  ;;  %v704_v0 = vld [vmem:[%s1002_s1 + $0x78] sm:$0xff]  ;;  %v709_v1 = vld [vmem:[%s1002_s1 + $0x70] sm:$0xff]  ;;  %vm85_vm0 = vcmask 64512   ;;  %s567_s16 = sshll.u32 %s1006_s5, 4  ;;  %s568_s16 = int_to_ptr.hbm [resolvable:$true] %s567_s16 }
   0x7   :  { %65 = vmatpush.msra.mxu2 %v704_v0  ;;  %v715_v2 = vld [vmem:[%s1002_s1 + $0x68] sm:$0xff]  ;;  %v721_v3 = vld [vmem:[%s1002_s1 + $0x60] sm:$0xff]  ;;  %v727_v4 = vld [vmem:[%s1002_s1 + $0x58] sm:$0xff] }
   0x8   :  { %v733_v5 = vld [vmem:[%s1002_s1 + $0x50] sm:$0xff]  ;;  %v739_v6 = vld [vmem:[%s1002_s1 + $0x48] sm:$0xff]  ;;  %v745_v7 = vld [vmem:[%s1002_s1 + $0x40] sm:$0xff] }
   0x9   :  { %66 = vmatpush.msra.mxu2 %v709_v1  ;;  %v751_v8 = vld [vmem:[%s1002_s1 + $0x38] sm:$0xff]  ;;  %v757_v9 = vld [vmem:[%s1002_s1 + $0x30] sm:$0xff]  ;;  %v763_v10 = vld [vmem:[%s1002_s1 + $0x28] sm:$0xff] }
   0xa   :  { %v769_v11 = vld [vmem:[%s1002_s1 + $0x20] sm:$0xff]  ;;  %v775_v12 = vld [vmem:[%s1002_s1 + $0x18] sm:$0xff]  ;;  %v781_v13 = vld [vmem:[%s1002_s1 + $0x10] sm:$0xff] }
   0xb   :  { %67 = vmatpush.msra.mxu2 %v715_v2  ;;  %v787_v14 = vld [vmem:[%s1002_s1 + $0x8] sm:$0xff]  ;;  %v793_v15 = vld [vmem:[%s1002_s1] sm:$0xff]  ;;  %v511_v37 = vld [vmem:[%s1004_s3 + $0x78] sm:$0xff] }
   0xc   :  { %v798_v16 = vld [vmem:[%s1005_s4] ss:$0 sm:$0xff]  ;;  %v117_v28 = vld [vmem:[#allocation4 + $0x8] sm:$0xff]  ;;  %v510_v38 = vld [vmem:[%s1004_s3 + $0x70] sm:$0xff] }
   0xd   :  { %68 = vmatpush.msra.mxu2 %v721_v3  ;;  %v838_v17 = vld [vmem:[%s1003_s2] sm:$0xff]  ;;  %v112_v23 = vmul.f32 0.8, %v798_v16  ;;  %v509_v39 = vld [vmem:[%s1004_s3 + $0x68] sm:$0xff]  ;;  %v507_v41 = vld [vmem:[%s1004_s3 + $0x58] sm:$0xff] }
   0xe   :  { %104 = vmatpush.msra.mxu1 %v838_v17  ;;  %156 = vmatpush.msra.mxu0 %v838_v17  ;;  %v64_v19 = vld [vmem:[#allocation4] sm:$0xff]  ;;  %v506_v42 = vld [vmem:[%s1004_s3 + $0x50] sm:$0xff]  ;;  %v505_v43 = vld [vmem:[%s1004_s3 + $0x48] sm:$0xff] }
   0xf   :  { %69 = vmatpush.msra.mxu2 %v727_v4  ;;  %209 = vmatpush.msra.mxu3 %v838_v17  ;;  %v508_v40 = vld [vmem:[%s1004_s3 + $0x60] sm:$0xff]  ;;  %v503_v45 = vld [vmem:[%s1004_s3 + $0x38] sm:$0xff]  ;;  %v170_v46 = vld [vmem:[#allocation4 + $0x10] sm:$0xff] }
  0x10   :  { %171 = vmatpush.msrb.mxu1 %v704_v0  ;;  %262 = vmatpush.msrb.mxu0 %v838_v17  ;;  %v504_v44 = vld [vmem:[%s1004_s3 + $0x40] sm:$0xff]  ;;  %v502_v48 = vld [vmem:[%s1004_s3 + $0x30] sm:$0xff]  ;;  %v501_v50 = vld [vmem:[%s1004_s3 + $0x28] sm:$0xff] }
  0x11   :  { %70 = vmatpush.msra.mxu2 %v733_v5  ;;  %224 = vmatpush.msrb.mxu3 %v704_v0  ;;  %v500_v56 = vld [vmem:[%s1004_s3 + $0x20] sm:$0xff]  ;;  %v499_v57 = vld [vmem:[%s1004_s3 + $0x18] sm:$0xff]  ;;  %v498_v58 = vld [vmem:[%s1004_s3 + $0x10] sm:$0xff] }
  0x12   :  { %172 = vmatpush.msrb.mxu1 %v709_v1  ;;  %v497_v59 = vld [vmem:[%s1004_s3 + $0x8] sm:$0xff]  ;;  %v496_v60 = vld [vmem:[%s1004_s3] sm:$0xff]  ;;  %v223_v62 = vld [vmem:[#allocation4 + $0x18] sm:$0xff]  ;;  %s664_s3 = smov [#allocation7]  }
  0x13   :  { %71 = vmatpush.msra.mxu2 %v739_v6  ;;  %225 = vmatpush.msrb.mxu3 %v709_v1  ;;  %s565_s13 = sshll.u32 %s664_s3, 4  ;;  %s566_s13 = int_to_ptr.vmem [resolvable:$true] %s565_s13 }
  0x14   :  { %173 = vmatpush.msrb.mxu1 %v715_v2 }
  0x15   :  { %72 = vmatpush.msra.mxu2 %v745_v7  ;;  %226 = vmatpush.msrb.mxu3 %v715_v2 }
  0x16   :  { %174 = vmatpush.msrb.mxu1 %v721_v3 }
  0x17   :  { %73 = vmatpush.msra.mxu2 %v751_v8  ;;  %227 = vmatpush.msrb.mxu3 %v721_v3 }
  0x18   :  { %175 = vmatpush.msrb.mxu1 %v727_v4 }
  0x19   :  { %74 = vmatpush.msra.mxu2 %v757_v9  ;;  %228 = vmatpush.msrb.mxu3 %v727_v4 }
  0x1a   :  { %176 = vmatpush.msrb.mxu1 %v733_v5 }
  0x1b   :  { %75 = vmatpush.msra.mxu2 %v763_v10  ;;  %229 = vmatpush.msrb.mxu3 %v733_v5 }
  0x1c   :  { %177 = vmatpush.msrb.mxu1 %v739_v6 }
  0x1d   :  { %76 = vmatpush.msra.mxu2 %v769_v11  ;;  %230 = vmatpush.msrb.mxu3 %v739_v6 }
  0x1e   :  { %178 = vmatpush.msrb.mxu1 %v745_v7 }
  0x1f   :  { %77 = vmatpush.msra.mxu2 %v775_v12  ;;  %231 = vmatpush.msrb.mxu3 %v745_v7 }
  0x20   :  { %179 = vmatpush.msrb.mxu1 %v751_v8 }
  0x21   :  { %78 = vmatpush.msra.mxu2 %v781_v13  ;;  %232 = vmatpush.msrb.mxu3 %v751_v8 }
  0x22   :  { %180 = vmatpush.msrb.mxu1 %v757_v9 }
  0x23   :  { %79 = vmatpush.msra.mxu2 %v787_v14  ;;  %233 = vmatpush.msrb.mxu3 %v757_v9 }
  0x24   :  { %181 = vmatpush.msrb.mxu1 %v763_v10 }
  0x25   :  { %80 = vmatpush.msra.mxu2 %v793_v15  ;;  %234 = vmatpush.msrb.mxu3 %v763_v10 }
  0x26   :  { %81 = vmatmul.f32.vlgmr.msra.gmra.mxu2 %v798_v16  ;;  %182 = vmatpush.msrb.mxu1 %v769_v11 }
  0x27   :  { %118 = vmatpush.msrb.mxu2 %v704_v0  ;;  %235 = vmatpush.msrb.mxu3 %v769_v11 }
  0x28   :  { %183 = vmatpush.msrb.mxu1 %v775_v12 }
  0x29   :  { %119 = vmatpush.msrb.mxu2 %v709_v1  ;;  %236 = vmatpush.msrb.mxu3 %v775_v12 }
  0x2a   :  { %184 = vmatpush.msrb.mxu1 %v781_v13 }
  0x2b   :  { %120 = vmatpush.msrb.mxu2 %v715_v2  ;;  %237 = vmatpush.msrb.mxu3 %v781_v13 }
  0x2c   :  { %185 = vmatpush.msrb.mxu1 %v787_v14 }
  0x2d   :  { %121 = vmatpush.msrb.mxu2 %v721_v3  ;;  %238 = vmatpush.msrb.mxu3 %v787_v14 }
  0x2e   :  { %186 = vmatpush.msrb.mxu1 %v793_v15 }
  0x2f   :  { %122 = vmatpush.msrb.mxu2 %v727_v4  ;;  %239 = vmatpush.msrb.mxu3 %v793_v15 }
  0x31   :  { %123 = vmatpush.msrb.mxu2 %v733_v5 }
  0x33   :  { %124 = vmatpush.msrb.mxu2 %v739_v6 }
  0x35   :  { %125 = vmatpush.msrb.mxu2 %v745_v7 }
  0x37   :  { %126 = vmatpush.msrb.mxu2 %v751_v8 }
  0x39   :  { %127 = vmatpush.msrb.mxu2 %v757_v9 }
  0x3b   :  { %128 = vmatpush.msrb.mxu2 %v763_v10 }
  0x3d   :  { %129 = vmatpush.msrb.mxu2 %v769_v11 }
  0x3f   :  { %130 = vmatpush.msrb.mxu2 %v775_v12 }
  0x41   :  { %131 = vmatpush.msrb.mxu2 %v781_v13 }
  0x43   :  { %132 = vmatpush.msrb.mxu2 %v787_v14 }
  0x45   :  { %133 = vmatpush.msrb.mxu2 %v793_v15 }
  0x47   :  { %277 = vmatpush.msra.mxu2 %v704_v0 }
  0x49   :  { %278 = vmatpush.msra.mxu2 %v709_v1 }
  0x4b   :  { %279 = vmatpush.msra.mxu2 %v715_v2 }
  0x4d   :  { %280 = vmatpush.msra.mxu2 %v721_v3 }
  0x4f   :  { %281 = vmatpush.msra.mxu2 %v727_v4 }
  0x51   :  { %282 = vmatpush.msra.mxu2 %v733_v5 }
  0x53   :  { %283 = vmatpush.msra.mxu2 %v739_v6 }
  0x55   :  { %284 = vmatpush.msra.mxu2 %v745_v7 }
  0x57   :  { %285 = vmatpush.msra.mxu2 %v751_v8 }
  0x59   :  { %286 = vmatpush.msra.mxu2 %v757_v9 }
  0x5b   :  { %287 = vmatpush.msra.mxu2 %v763_v10 }
  0x5d   :  { %288 = vmatpush.msra.mxu2 %v769_v11 }
  0x5f   :  { %289 = vmatpush.msra.mxu2 %v775_v12 }
  0x61   :  { %290 = vmatpush.msra.mxu2 %v781_v13 }
  0x63   :  { %291 = vmatpush.msra.mxu2 %v787_v14 }
  0x65   :  { %292 = vmatpush.msra.mxu2 %v793_v15 }
  0xa9   :  { %v82_v18 = vpop.f32.mrf.mxu2 }
  0xaa   :  { %580 = vmatmul.msk.f32.vlgmr.msra.gmra.mxu1 %vm85_vm0, %v82_v18 }
  0xab   :  { %315 = vmatpush.msra.mxu1 %v838_v17 }
 0x127   :  { %v106_v20 = vpop.f32.mrf.mxu1 }
 0x128   :  { %v109_v21 = vmul.f32 0.03125, %v106_v20 }
 0x12a   :  { %v110_v22 = vadd.f32 %v109_v21, %v64_v19 }
 0x12c   :  { %593 = vtanh.f32 %v110_v22 }
 0x132   :  { %v594_v24 = vpop.eup %593 }
 0x133   :  { %v113_v25 = vmul.f32 0.2, %v594_v24 }
 0x135   :  { %v879_v26 = vadd.f32 %v113_v25, %v112_v23 }
 0x137   :  { %134 = vmatmul.f32.vlgmr.msrb.gmra.mxu2 %v879_v26  ;;  %v164_v34 = vmul.f32 0.8, %v879_v26 }
 0x1ba   :  { %v135_v27 = vpop.f32.mrf.mxu2 }
 0x1bb   :  { %581 = vmatmul.msk.f32.vlgmr.msra.gmra.mxu0 %vm85_vm0, %v135_v27 }
 0x1bc   :  { %512 = vmatpush.msra.mxu0 %v511_v37 }
 0x1be   :  { %513 = vmatpush.msra.mxu0 %v510_v38 }
 0x1c0   :  { %514 = vmatpush.msra.mxu0 %v509_v39 }
 0x1c2   :  { %515 = vmatpush.msra.mxu0 %v508_v40 }
 0x1c4   :  { %516 = vmatpush.msra.mxu0 %v507_v41 }
 0x1c6   :  { %517 = vmatpush.msra.mxu0 %v506_v42  ;;  %v435_v42 = vld [vmem:[#allocation4 + $0x38] sm:$0xff] }
 0x1c8   :  { %518 = vmatpush.msra.mxu0 %v505_v43 }
 0x1ca   :  { %519 = vmatpush.msra.mxu0 %v504_v44 }
 0x1cc   :  { %520 = vmatpush.msra.mxu0 %v503_v45 }
 0x1ce   :  { %521 = vmatpush.msra.mxu0 %v502_v48 }
 0x1d0   :  { %522 = vmatpush.msra.mxu0 %v501_v50 }
 0x1d2   :  { %523 = vmatpush.msra.mxu0 %v500_v56 }
 0x1d4   :  { %524 = vmatpush.msra.mxu0 %v499_v57 }
 0x1d6   :  { %525 = vmatpush.msra.mxu0 %v498_v58 }
 0x1d8   :  { %526 = vmatpush.msra.mxu0 %v497_v59 }
 0x1da   :  { %527 = vmatpush.msra.mxu0 %v496_v60 }
 0x238   :  { %v158_v29 = vpop.f32.mrf.mxu0 }
 0x239   :  { %v161_v30 = vmul.f32 0.03125, %v158_v29 }
 0x23b   :  { %v162_v31 = vadd.f32 %v161_v30, %v117_v28  ;;  %v276_v28 = vld [vmem:[#allocation4 + $0x20] sm:$0xff] }
 0x23d   :  { %595 = vtanh.f32 %v162_v31 }
 0x243   :  { %v596_v32 = vpop.eup %595 }
 0x244   :  { %v165_v33 = vmul.f32 0.2, %v596_v32 }
 0x246   :  { %v884_v35 = vadd.f32 %v165_v33, %v164_v34 }
 0x248   :  { %187 = vmatmul.f32.vlgmr.msrb.gmra.mxu1 %v884_v35  ;;  %v217_v54 = vmul.f32 0.8, %v884_v35 }
 0x249   :  { %368 = vmatpush.msrb.mxu1 %v838_v17 }
 0x2c5   :  { %v188_v36 = vpop.f32.mrf.mxu1 }
 0x2c6   :  { %582 = vmatmul.msk.f32.vlgmr.msra.gmra.mxu3 %vm85_vm0, %v188_v36 }
 0x2c7   :  { %330 = vmatpush.msra.mxu3 %v704_v0 }
 0x2c9   :  { %331 = vmatpush.msra.mxu3 %v709_v1 }
 0x2cb   :  { %332 = vmatpush.msra.mxu3 %v715_v2 }
 0x2cd   :  { %333 = vmatpush.msra.mxu3 %v721_v3 }
 0x2cf   :  { %334 = vmatpush.msra.mxu3 %v727_v4 }
 0x2d1   :  { %335 = vmatpush.msra.mxu3 %v733_v5 }
 0x2d3   :  { %336 = vmatpush.msra.mxu3 %v739_v6 }
 0x2d5   :  { %337 = vmatpush.msra.mxu3 %v745_v7 }
 0x2d7   :  { %338 = vmatpush.msra.mxu3 %v751_v8 }
 0x2d9   :  { %339 = vmatpush.msra.mxu3 %v757_v9 }
 0x2db   :  { %340 = vmatpush.msra.mxu3 %v763_v10 }
 0x2dd   :  { %341 = vmatpush.msra.mxu3 %v769_v11 }
 0x2df   :  { %342 = vmatpush.msra.mxu3 %v775_v12 }
 0x2e1   :  { %343 = vmatpush.msra.mxu3 %v781_v13 }
 0x2e3   :  { %344 = vmatpush.msra.mxu3 %v787_v14 }
 0x2e5   :  { %345 = vmatpush.msra.mxu3 %v793_v15 }
 0x349   :  { %v211_v47 = vpop.f32.mrf.mxu3 }
 0x34a   :  { %v214_v49 = vmul.f32 0.03125, %v211_v47 }
 0x34c   :  { %v215_v51 = vadd.f32 %v214_v49, %v170_v46 }
 0x34e   :  { %597 = vtanh.f32 %v215_v51 }
 0x354   :  { %v598_v52 = vpop.eup %597 }
 0x355   :  { %v218_v53 = vmul.f32 0.2, %v598_v52 }
 0x357   :  { %v219_v55 = vadd.f32 %v218_v53, %v217_v54 }
 0x359   :  { %240 = vmatmul.f32.vlgmr.msrb.gmra.mxu3 %v219_v55  ;;  %v270_v21 = vmul.f32 0.8, %v219_v55 }
 0x35a   :  { %383 = vmatpush.msrb.mxu3 %v704_v0 }
 0x35c   :  { %384 = vmatpush.msrb.mxu3 %v709_v1 }
 0x35e   :  { %385 = vmatpush.msrb.mxu3 %v715_v2 }
 0x360   :  { %386 = vmatpush.msrb.mxu3 %v721_v3 }
 0x362   :  { %387 = vmatpush.msrb.mxu3 %v727_v4 }
 0x364   :  { %388 = vmatpush.msrb.mxu3 %v733_v5 }
 0x366   :  { %389 = vmatpush.msrb.mxu3 %v739_v6 }
 0x368   :  { %390 = vmatpush.msrb.mxu3 %v745_v7 }
 0x36a   :  { %391 = vmatpush.msrb.mxu3 %v751_v8 }
 0x36c   :  { %392 = vmatpush.msrb.mxu3 %v757_v9 }
 0x36e   :  { %393 = vmatpush.msrb.mxu3 %v763_v10 }
 0x370   :  { %394 = vmatpush.msrb.mxu3 %v769_v11 }
 0x372   :  { %395 = vmatpush.msrb.mxu3 %v775_v12 }
 0x374   :  { %396 = vmatpush.msrb.mxu3 %v781_v13 }
 0x376   :  { %397 = vmatpush.msrb.mxu3 %v787_v14 }
 0x378   :  { %398 = vmatpush.msrb.mxu3 %v793_v15 }
 0x3dc   :  { %v241_v61 = vpop.f32.mrf.mxu3 }
 0x3dd   :  { %583 = vmatmul.msk.f32.vlgmr.msrb.gmra.mxu0 %vm85_vm0, %v241_v61 }
 0x3e5   :  { %528 = vmatmul.f32.vlgmr.msra.gmra.mxu0 %v879_v26 }
 0x3ed   :  { %531 = vmatmul.f32.gmra.mxu0 %v884_v35 }
 0x3f5   :  { %534 = vmatmul.f32.gmra.mxu0 %v219_v55 }
 0x45a   :  { %v264_v63 = vpop.f32.mrf.mxu0 }
 0x45b   :  { %v267_v16 = vmul.f32 0.03125, %v264_v63 }
 0x45d   :  { %v268_v18 = vadd.f32 %v267_v16, %v223_v62 }
 0x45f   :  { %599 = vtanh.f32 %v268_v18 }
 0x462   :  { %v529_v19 = vpop.f32.mrf.mxu0 }
 0x463   :  { %553 = vst [vmem:[#allocation7] sm:$0xff] %v529_v19 }
 0x465   :  { %v600_v20 = vpop.eup %599 }
 0x466   :  { %v271_v22 = vmul.f32 0.2, %v600_v20 }
 0x468   :  { %v272_v23 = vadd.f32 %v271_v22, %v270_v21 }
 0x46a   :  { %293 = vmatmul.f32.vlgmr.msra.gmra.mxu2 %v272_v23  ;;  %v532_v24 = vpop.f32.mrf.mxu0  ;;  %537 = vmatmul.f32.gmra.mxu0 %v272_v23  ;;  %v323_v33 = vmul.f32 0.8, %v272_v23 }
 0x46b   :  { %554 = vst [vmem:[#allocation7 + $0x8] sm:$0xff] %v532_v24 }
 0x472   :  { %v535_v25 = vpop.f32.mrf.mxu0 }
 0x473   :  { %555 = vst [vmem:[#allocation7 + $0x10] sm:$0xff] %v535_v25 }
 0x4e7   :  { %v538_v26 = vpop.f32.mrf.mxu0 }
 0x4e8   :  { %556 = vst [vmem:[#allocation7 + $0x18] sm:$0xff] %v538_v26 }
 0x4ed   :  { %v294_v27 = vpop.f32.mrf.mxu2 }
 0x4ee   :  { %584 = vmatmul.msk.f32.vlgmr.msra.gmra.mxu1 %vm85_vm0, %v294_v27 }
 0x4ef   :  { %421 = vmatpush.msra.mxu1 %v838_v17 }
 0x56b   :  { %v317_v29 = vpop.f32.mrf.mxu1 }
 0x56c   :  { %v320_v30 = vmul.f32 0.03125, %v317_v29 }
 0x56e   :  { %v321_v31 = vadd.f32 %v320_v30, %v276_v28 }
 0x570   :  { %601 = vtanh.f32 %v321_v31 }
 0x576   :  { %v602_v32 = vpop.eup %601 }
 0x577   :  { %v324_v34 = vmul.f32 0.2, %v602_v32 }
 0x579   :  { %v325_v35 = vadd.f32 %v324_v34, %v323_v33 }
 0x57b   :  { %346 = vmatmul.f32.vlgmr.msra.gmra.mxu3 %v325_v35  ;;  %540 = vmatmul.f32.gmra.mxu0 %v325_v35 }
 0x5f8   :  { %v541_v36 = vpop.f32.mrf.mxu0 }
 0x5f9   :  { %557 = vst [vmem:[#allocation7 + $0x20] sm:$0xff] %v541_v36 }
 0x5fe   :  { %v347_v37 = vpop.f32.mrf.mxu3 }
 0x5ff   :  { %585 = vmatmul.msk.f32.vlgmr.msrb.gmra.mxu1 %vm85_vm0, %v347_v37 }
 0x600   :  { %436 = vmatpush.msrb.mxu1 %v704_v0  ;;  %v329_v0 = vld [vmem:[#allocation4 + $0x28] sm:$0xff] }
 0x602   :  { %437 = vmatpush.msrb.mxu1 %v709_v1 }
 0x604   :  { %438 = vmatpush.msrb.mxu1 %v715_v2 }
 0x606   :  { %439 = vmatpush.msrb.mxu1 %v721_v3 }
 0x608   :  { %440 = vmatpush.msrb.mxu1 %v727_v4 }
 0x60a   :  { %441 = vmatpush.msrb.mxu1 %v733_v5  ;;  %v376_v5 = vmul.f32 0.8, %v325_v35 }
 0x60c   :  { %442 = vmatpush.msrb.mxu1 %v739_v6 }
 0x60e   :  { %443 = vmatpush.msrb.mxu1 %v745_v7 }
 0x610   :  { %444 = vmatpush.msrb.mxu1 %v751_v8 }
 0x612   :  { %445 = vmatpush.msrb.mxu1 %v757_v9 }
 0x614   :  { %446 = vmatpush.msrb.mxu1 %v763_v10  ;;  %v382_v10 = vld [vmem:[#allocation4 + $0x30] sm:$0xff] }
 0x616   :  { %447 = vmatpush.msrb.mxu1 %v769_v11 }
 0x618   :  { %448 = vmatpush.msrb.mxu1 %v775_v12 }
 0x61a   :  { %449 = vmatpush.msrb.mxu1 %v781_v13 }
 0x61c   :  { %450 = vmatpush.msrb.mxu1 %v787_v14 }
 0x61e   :  { %451 = vmatpush.msrb.mxu1 %v793_v15 }
 0x67c   :  { %v370_v1 = vpop.f32.mrf.mxu1 }
 0x67d   :  { %v373_v2 = vmul.f32 0.03125, %v370_v1 }
 0x67f   :  { %v374_v3 = vadd.f32 %v373_v2, %v329_v0 }
 0x681   :  { %603 = vtanh.f32 %v374_v3 }
 0x687   :  { %v604_v4 = vpop.eup %603 }
 0x688   :  { %v377_v6 = vmul.f32 0.2, %v604_v4 }
 0x68a   :  { %v378_v7 = vadd.f32 %v377_v6, %v376_v5 }
 0x68c   :  { %399 = vmatmul.f32.vlgmr.msrb.gmra.mxu3 %v378_v7  ;;  %543 = vmatmul.f32.gmra.mxu0 %v378_v7  ;;  %v429_v15 = vmul.f32 0.8, %v378_v7 }
 0x709   :  { %v544_v8 = vpop.f32.mrf.mxu0 }
 0x70a   :  { %558 = vst [vmem:[#allocation7 + $0x28] sm:$0xff] %v544_v8 }
 0x70f   :  { %v400_v9 = vpop.f32.mrf.mxu3 }
 0x710   :  { %586 = vmatmul.msk.f32.vlgmr.msra.gmra.mxu1 %vm85_vm0, %v400_v9 }
 0x711   :  { %474 = vmatpush.msra.mxu1 %v838_v17 }
 0x78d   :  { %v423_v11 = vpop.f32.mrf.mxu1 }
 0x78e   :  { %v426_v12 = vmul.f32 0.03125, %v423_v11 }
 0x790   :  { %v427_v13 = vadd.f32 %v426_v12, %v382_v10 }
 0x792   :  { %605 = vtanh.f32 %v427_v13 }
 0x798   :  { %v606_v14 = vpop.eup %605 }
 0x799   :  { %v430_v38 = vmul.f32 0.2, %v606_v14 }
 0x79b   :  { %v431_v39 = vadd.f32 %v430_v38, %v429_v15 }
 0x79d   :  { %452 = vmatmul.f32.vlgmr.msrb.gmra.mxu1 %v431_v39  ;;  %546 = vmatmul.f32.gmra.mxu0 %v431_v39  ;;  %v482_v46 = vmul.f32 0.8, %v431_v39 }
 0x81a   :  { %v453_v40 = vpop.f32.mrf.mxu1  ;;  %v547_v41 = vpop.f32.mrf.mxu0 }
 0x81b   :  { %559 = vst [vmem:[#allocation7 + $0x30] sm:$0xff] %v547_v41  ;;  %587 = vmatmul.msk.f32.vlgmr.msra.gmra.mxu1 %vm85_vm0, %v453_v40 }
 0x898   :  { %v476_v43 = vpop.f32.mrf.mxu1 }
 0x899   :  { %v479_v44 = vmul.f32 0.03125, %v476_v43 }
 0x89b   :  { %v480_v17 = vadd.f32 %v479_v44, %v435_v42 }
 0x89d   :  { %607 = vtanh.f32 %v480_v17 }
 0x8a3   :  { %v608_v45 = vpop.eup %607 }
 0x8a4   :  { %v483_v47 = vmul.f32 0.2, %v608_v45 }
 0x8a6   :  { %v484_v48 = vadd.f32 %v483_v47, %v482_v46 }
 0x8a8   :  { %549 = vmatmul.f32.gmra.mxu0 %v484_v48 }
 0x925   :  { %v550_v49 = vpop.f32.mrf.mxu0 }
 0x926   :  { %560 = vst [vmem:[#allocation7 + $0x38] sm:$0xff] %v550_v49 }
 0x927   :  { %573 = dma.vmem_to_hbm [thread:$0]  %s566_s13, 1024, %s568_s16, [#allocation6], %s662_s23, %s662_s23, %s663_s24  }
 0x928   :  { %659 = dma.done.wait [#allocation6], 1024  }
 0x929   :  { %660 = vsyncadd [#allocation6], 4294966272 }
 0x92a   :  { %578 = vsyncpa [#allocation5], 1 }
 0x92b   :  { %579 = vsyncpa [#allocation6], 1 }

</bundles_post_ra>
